<compile_context>
chip_gen: v6e
topology: v6e:2x2x1
jax: 0.10.0
libtpu: 0.0.40
codegen_flags: <defaults>
</compile_context>

<pallas_src>
import functools
import math

import jax
import jax.numpy as jnp
from jax.experimental import pallas as pl
from jax.experimental.pallas import tpu as pltpu


NEG_BIG = -1e30                       # additive bias for padded keys (no -inf -> NaN)
LN_EPS = 1e-5                         # torch.nn.LayerNorm default
COMPUTE_DTYPE = jnp.bfloat16          # MXU operand dtype; accumulation stays f32
FUSED_VMEM_LIMIT = 48 * 1024 * 1024   # explicit scoped-VMEM cap for fused kernels


# -----------------------------------------------------------------------------
# Parameter / table construction (setup glue, same math as the PyTorch __init__).
# -----------------------------------------------------------------------------
def make_positional_encoding(max_len, d_model, dtype=jnp.float32):
    position = jnp.arange(max_len, dtype=jnp.float32)[:, None]            # (L, 1)
    div_term = jnp.exp(jnp.arange(0, d_model, 2, dtype=jnp.float32)
                       * (-math.log(10000.0) / d_model))                  # (D/2,)
    angles = position * div_term                                          # (L, D/2)
    pe = jnp.zeros((max_len, d_model), jnp.float32)
    pe = pe.at[:, 0::2].set(jnp.sin(angles))
    pe = pe.at[:, 1::2].set(jnp.cos(angles))
    return pe.astype(dtype)


def init_params(key, input_size, d_model, hidden, n_layers, total_speakers,
                max_len):
    keys = iter(jax.random.split(key, 64))

    def w(shape, fan_in):
        return (1.0 / math.sqrt(fan_in)) * jax.random.normal(
            next(keys), shape, jnp.float32)

    params = {
        "w_embed": w((input_size, d_model), input_size),
        "b_embed": jnp.zeros((1, d_model), jnp.float32),
        "pe": make_positional_encoding(max_len, d_model),
        "w_cls": w((d_model, total_speakers), d_model),
        "b_cls": jnp.zeros((1, total_speakers), jnp.float32),
        "layers": [],
    }
    for _ in range(n_layers):
        params["layers"].append({
            "attn": {
                "w_in": w((d_model, 3 * d_model), d_model),
                "b_in": jnp.zeros((1, 3 * d_model), jnp.float32),
                "w_out": w((d_model, d_model), d_model),
                "b_out": jnp.zeros((1, d_model), jnp.float32),
            },
            "ln1_g": jnp.ones((1, d_model), jnp.float32),
            "ln1_b": jnp.zeros((1, d_model), jnp.float32),
            "w_ff1": w((d_model, hidden), d_model),
            "b_ff1": jnp.zeros((1, hidden), jnp.float32),
            "w_ff2": w((hidden, d_model), hidden),
            "b_ff2": jnp.zeros((1, d_model), jnp.float32),
            "ln2_g": jnp.ones((1, d_model), jnp.float32),
            "ln2_b": jnp.zeros((1, d_model), jnp.float32),
        })
    return params


# -----------------------------------------------------------------------------
# Kernel 1: embedding linear + positional-encoding add (fused), grid over batch.
# -----------------------------------------------------------------------------
def _embed_pe_kernel(src_ref, w_ref, b_ref, pe_ref, o_ref):
    # src: (S, I)  w: (I, D)  b: (1, D)  pe: (S, D)  o: (S, D)
    x = jnp.dot(src_ref[...].astype(COMPUTE_DTYPE),
                w_ref[...].astype(COMPUTE_DTYPE),
                preferred_element_type=jnp.float32)
    o_ref[...] = (x + b_ref[...] + pe_ref[...]).astype(o_ref.dtype)


def embed_with_positional_encoding(src, w, b, pe_full):
    """(B, S, I) -> (B, S, D) = src @ w + b + pe[:S]   (pos-enc dropout p=0.0)."""
    B, S, I = src.shape
    D = w.shape[1]
    assert S <= pe_full.shape[0], (S, pe_full.shape)
    pe = pe_full[:S]          # wrapper-side slice: every block == full array dims
    flops = 2 * B * S * I * D
    bytes_accessed = 4 * (B * S * I + I * D + D + S * D + B * S * D)
    return pl.pallas_call(
        _embed_pe_kernel,
        out_shape=jax.ShapeDtypeStruct((B, S, D), src.dtype),
        grid=(B,),
        in_specs=[
            pl.BlockSpec((None, S, I), lambda i: (i, 0, 0)),   # one batch row
            pl.BlockSpec((I, D), lambda i: (0, 0)),            # embed weight
            pl.BlockSpec((1, D), lambda i: (0, 0)),            # embed bias
            pl.BlockSpec((S, D), lambda i: (0, 0)),            # pe[:S]
        ],
        out_specs=pl.BlockSpec((None, S, D), lambda i: (i, 0, 0)),
        compiler_params=pltpu.CompilerParams(dimension_semantics=("parallel",)),
        cost_estimate=pl.CostEstimate(flops=flops, transcendentals=0,
                                      bytes_accessed=bytes_accessed),
    )(src, w, b, pe)


# -----------------------------------------------------------------------------
# Kernel 2: fused attention block
#   QKV proj -> per-head masked softmax attention -> out proj -> +res -> LN1
# -----------------------------------------------------------------------------
def _attn_block_kernel(x_ref, win_ref, bin_ref, wout_ref, bout_ref, m_ref,
                       g_ref, beta_ref, o_ref, *, n_heads, scale):
    x = x_ref[...].astype(jnp.float32)                                # (S, D)
    D = x.shape[-1]
    hd = D // n_heads

    qkv = jnp.dot(x.astype(COMPUTE_DTYPE), win_ref[...].astype(COMPUTE_DTYPE),
                  preferred_element_type=jnp.float32) + bin_ref[...]  # (S, 3D)
    mask = m_ref[...]                                                 # (1, S)

    heads = []
    for h in range(n_heads):            # static unroll; heads never touch HBM
        q = qkv[:, h * hd:(h + 1) * hd] * scale
        k = qkv[:, D + h * hd:D + (h + 1) * hd]
        v = qkv[:, 2 * D + h * hd:2 * D + (h + 1) * hd]
        s = jax.lax.dot_general(q.astype(COMPUTE_DTYPE), k.astype(COMPUTE_DTYPE),
                                (((1,), (1,)), ((), ())),
                                preferred_element_type=jnp.float32)   # (S, S)
        s = s + mask                                   # broadcast over queries
        s_max = jnp.max(s, axis=-1, keepdims=True)
        p = jnp.exp(s - s_max)
        inv = pl.reciprocal(jnp.sum(p, axis=-1, keepdims=True), approx=True)
        o_h = jnp.dot(p.astype(COMPUTE_DTYPE), v.astype(COMPUTE_DTYPE),
                      preferred_element_type=jnp.float32) * inv       # (S, hd)
        heads.append(o_h)

    attn = jnp.concatenate(heads, axis=-1)                            # (S, D)
    attn = jnp.dot(attn.astype(COMPUTE_DTYPE),
                   wout_ref[...].astype(COMPUTE_DTYPE),
                   preferred_element_type=jnp.float32) + bout_ref[...]

    y = x + attn                                                      # residual
    mu = jnp.mean(y, axis=-1, keepdims=True)
    c = y - mu
    var = jnp.mean(c * c, axis=-1, keepdims=True)
    y = c * jax.lax.rsqrt(var + LN_EPS)
    o_ref[...] = (y * g_ref[...] + beta_ref[...]).astype(o_ref.dtype)


def attention_block(x, attn_p, ln_g, ln_b, mask_bias, n_heads):
    """x: (B, S, D); mask_bias: (B, 1, S) additive (0 / NEG_BIG on padded keys)."""
    B, S, D = x.shape
    kernel = functools.partial(_attn_block_kernel, n_heads=n_heads,
                               scale=1.0 / math.sqrt(D // n_heads))
    flops = B * (8 * S * D * D + 4 * S * S * D)
    bytes_accessed = 4 * (2 * B * S * D + 4 * D * D + 5 * D + B * S)
    return pl.pallas_call(
        kernel,
        out_shape=jax.ShapeDtypeStruct((B, S, D), x.dtype),
        grid=(B,),
        in_specs=[
            pl.BlockSpec((None, S, D), lambda b: (b, 0, 0)),      # x (residual)
            pl.BlockSpec((D, 3 * D), lambda b: (0, 0)),           # w_in
            pl.BlockSpec((1, 3 * D), lambda b: (0, 0)),           # b_in
            pl.BlockSpec((D, D), lambda b: (0, 0)),               # w_out
            pl.BlockSpec((1, D), lambda b: (0, 0)),               # b_out
            pl.BlockSpec((None, 1, S), lambda b: (b, 0, 0)),      # key-pad bias
            pl.BlockSpec((1, D), lambda b: (0, 0)),               # ln1 gamma
            pl.BlockSpec((1, D), lambda b: (0, 0)),               # ln1 beta
        ],
        out_specs=pl.BlockSpec((None, S, D), lambda b: (b, 0, 0)),
        compiler_params=pltpu.CompilerParams(
            dimension_semantics=("parallel",),
            vmem_limit_bytes=FUSED_VMEM_LIMIT),
        cost_estimate=pl.CostEstimate(flops=flops,
                                      transcendentals=B * n_heads * S * S,
                                      bytes_accessed=bytes_accessed),
    )(x, attn_p["w_in"], attn_p["b_in"], attn_p["w_out"], attn_p["b_out"],
      mask_bias, ln_g, ln_b)


# -----------------------------------------------------------------------------
# Kernel 3: fused FFN block (FF1+ReLU -> FF2 -> +res -> LN2), row-tiled.
# -----------------------------------------------------------------------------
def _ffn_block_kernel(x_ref, w1_ref, b1_ref, w2_ref, b2_ref, g_ref, beta_ref,
                      o_ref):
    x = x_ref[...].astype(jnp.float32)                                # (tr, D)
    h = jnp.dot(x.astype(COMPUTE_DTYPE), w1_ref[...].astype(COMPUTE_DTYPE),
                preferred_element_type=jnp.float32) + b1_ref[...]
    h = jnp.maximum(h, 0.0)
    f = jnp.dot(h.astype(COMPUTE_DTYPE), w2_ref[...].astype(COMPUTE_DTYPE),
                preferred_element_type=jnp.float32) + b2_ref[...]
    y = x + f                                                         # residual
    mu = jnp.mean(y, axis=-1, keepdims=True)
    c = y - mu
    var = jnp.mean(c * c, axis=-1, keepdims=True)
    y = c * jax.lax.rsqrt(var + LN_EPS)
    o_ref[...] = (y * g_ref[...] + beta_ref[...]).astype(o_ref.dtype)


def _pick_row_tile(rows):
    """Largest 8-aligned tile <= 512 that divides rows (else the full extent)."""
    for t in (512, 256, 128, 64, 32, 16, 8):
        if rows % t == 0:
            return t
    return rows


def ffn_block(x, w1, b1, w2, b2, ln_g, ln_b):
    """FFN + residual + LayerNorm on flattened (B*S, D) rows (per-token math)."""
    B, S, D = x.shape
    H = w1.shape[1]
    R = B * S
    tr = _pick_row_tile(R)
    x2 = x.reshape(R, D)                       # contiguous reshape, no transpose
    flops = 4 * R * D * H
    bytes_accessed = 4 * (2 * R * D + 2 * D * H + H + 3 * D)
    y2 = pl.pallas_call(
        _ffn_block_kernel,
        out_shape=jax.ShapeDtypeStruct((R, D), x.dtype),
        grid=(R // tr,),
        in_specs=[
            pl.BlockSpec((tr, D), lambda i: (i, 0)),              # activations
            pl.BlockSpec((D, H), lambda i: (0, 0)),               # w_ff1
            pl.BlockSpec((1, H), lambda i: (0, 0)),               # b_ff1
            pl.BlockSpec((H, D), lambda i: (0, 0)),               # w_ff2
            pl.BlockSpec((1, D), lambda i: (0, 0)),               # b_ff2
            pl.BlockSpec((1, D), lambda i: (0, 0)),               # ln2 gamma
            pl.BlockSpec((1, D), lambda i: (0, 0)),               # ln2 beta
        ],
        out_specs=pl.BlockSpec((tr, D), lambda i: (i, 0)),
        compiler_params=pltpu.CompilerParams(
            dimension_semantics=("parallel",),
            vmem_limit_bytes=FUSED_VMEM_LIMIT),
        cost_estimate=pl.CostEstimate(flops=flops, transcendentals=0,
                                      bytes_accessed=bytes_accessed),
    )(x2, w1, b1, w2, b2, ln_g, ln_b)
    return y2.reshape(B, S, D)


# -----------------------------------------------------------------------------
# Kernel 4: classifier head (linear + log_softmax) on the bos embedding.
# -----------------------------------------------------------------------------
def _classifier_head_kernel(x_ref, w_ref, b_ref, o_ref):
    logits = jnp.dot(x_ref[...], w_ref[...], preferred_element_type=jnp.float32)
    logits = logits + b_ref[...]
    m = jnp.max(logits, axis=-1, keepdims=True)
    z = logits - m
    lse = jnp.log(jnp.sum(jnp.exp(z), axis=-1, keepdims=True))
    o_ref[...] = (z - lse).astype(o_ref.dtype)


def classifier_log_softmax(bos, w, b):
    B, D = bos.shape
    T = w.shape[1]
    return pl.pallas_call(
        _classifier_head_kernel,
        out_shape=jax.ShapeDtypeStruct((B, T), bos.dtype),
        in_specs=[
            pl.BlockSpec((B, D), lambda: (0, 0)),
            pl.BlockSpec((D, T), lambda: (0, 0)),
            pl.BlockSpec((1, T), lambda: (0, 0)),
        ],
        out_specs=pl.BlockSpec((B, T), lambda: (0, 0)),
    )(bos, w, b)


# -----------------------------------------------------------------------------
# Full forward (mirrors ContinuousClassifier.forward, inference semantics)
# -----------------------------------------------------------------------------
def continuous_classifier_forward(params, dense, units, pad_value, n_heads):
    """dense: (B, S, input_size) float32; units: (B, S) int32."""
    B, S, _ = dense.shape
    padding_mask = units == pad_value                                 # (B, S) bool
    mask_bias = jnp.where(padding_mask, jnp.float32(NEG_BIG),
                          jnp.float32(0.0)).reshape(B, 1, S)

    # torch does src.transpose(1, 0) (seq-first); the math is per-token, so we
    # keep batch-first (B, S, .) which is exactly the per-batch grid layout.
    x = embed_with_positional_encoding(dense, params["w_embed"],
                                       params["b_embed"], params["pe"])

    for layer in params["layers"]:
        # TransformerEncoderLayer, post-norm, relu, dropout=identity (inference).
        x = attention_block(x, layer["attn"], layer["ln1_g"], layer["ln1_b"],
                            mask_bias, n_heads)
        x = ffn_block(x, layer["w_ff1"], layer["b_ff1"],
                      layer["w_ff2"], layer["b_ff2"],
                      layer["ln2_g"], layer["ln2_b"])

    bos = x[:, 0, :]                      # == x[0, :] in the seq-first layout
    return classifier_log_softmax(bos, params["w_cls"], params["b_cls"])


# -----------------------------------------------------------------------------
# Pure-JAX f32 reference (same params / same math) for a correctness check.
# -----------------------------------------------------------------------------
def reference_forward(params, dense, units, pad_value, n_heads, eps=LN_EPS):
    B, S, _ = dense.shape
    bias = jnp.where(units == pad_value, NEG_BIG, 0.0)[:, None, None, :]
    x = dense @ params["w_embed"] + params["b_embed"] + params["pe"][:S][None]
    D = x.shape[-1]
    hd = D // n_heads

    def ln(y, g, b):
        mu = y.mean(-1, keepdims=True)
        var = ((y - mu) ** 2).mean(-1, keepdims=True)
        return (y - mu) / jnp.sqrt(var + eps) * g + b

    for layer in params["layers"]:
        a = layer["attn"]
        qkv = (x @ a["w_in"] + a["b_in"]).reshape(B, S, 3, n_heads, hd)
        qkv = jnp.transpose(qkv, (2, 0, 3, 1, 4))
        q, k, v = qkv[0], qkv[1], qkv[2]
        s = jnp.einsum("bhqd,bhkd->bhqk", q, k) / math.sqrt(hd) + bias
        p = jax.nn.softmax(s, axis=-1)
        o = jnp.einsum("bhqk,bhkd->bhqd", p, v)
        o = jnp.transpose(o, (0, 2, 1, 3)).reshape(B, S, D)
        o = o @ a["w_out"] + a["b_out"]
        x = ln(x + o, layer["ln1_g"], layer["ln1_b"])
        h = jax.nn.relu(x @ layer["w_ff1"] + layer["b_ff1"])
        f = h @ layer["w_ff2"] + layer["b_ff2"]
        x = ln(x + f, layer["ln2_g"], layer["ln2_b"])

    logits = x[:, 0, :] @ params["w_cls"] + params["b_cls"]
    return jax.nn.log_softmax(logits, axis=-1)


if __name__ == "__main__":
    B, S = 2, 8
    INPUT_SIZE, D_MODEL, N_HEADS, HIDDEN = 16, 32, 4, 64
    N_LAYERS, TOTAL_SPEAKERS, MAX_LEN, PAD_VALUE = 2, 10, 64, -1

    root = jax.random.PRNGKey(0)
    k_dense, k_units, k_params = jax.random.split(root, 3)
    dense = jax.random.normal(k_dense, (B, S, INPUT_SIZE), jnp.float32)
    units = jax.random.randint(k_units, (B, S), 0, 5, jnp.int32)
    units = units.at[1, S - 2:].set(PAD_VALUE)   # pad the tail of batch row 1

    params = init_params(k_params, INPUT_SIZE, D_MODEL, HIDDEN, N_LAYERS,
                         TOTAL_SPEAKERS, MAX_LEN)

    out = continuous_classifier_forward(params, dense, units, PAD_VALUE, N_HEADS)
    out = jax.block_until_ready(out)
    assert out.shape == (B, TOTAL_SPEAKERS), out.shape
    # Rows of log-probabilities must exponentiate-and-sum to 1.
    assert jnp.allclose(jnp.exp(out).sum(-1), 1.0, atol=1e-3)

    ref = reference_forward(params, dense, units, PAD_VALUE, N_HEADS)
    # Tolerance accounts for bf16 MXU operands (f32 accumulation) and the
    # approximate EUP reciprocal in the softmax normalization.
    assert jnp.allclose(out, ref, atol=5e-2, rtol=5e-2), (
        "max abs err", float(jnp.max(jnp.abs(out - ref))))

    print("KERNEL_OK")
</pallas_src>

<mosaic_0001>
module attributes {stable_mosaic.version = 11 : i64} {
  func.func @_embed_pe_kernel(%arg0: i32, %arg1: memref<1x8x16xf32, #tpu.memory_space<vmem>>, %arg2: memref<16x32xf32, #tpu.memory_space<vmem>>, %arg3: memref<1x32xf32, #tpu.memory_space<vmem>>, %arg4: memref<8x32xf32, #tpu.memory_space<vmem>>, %arg5: memref<1x8x32xf32, #tpu.memory_space<vmem>>) attributes {dimension_semantics = [#tpu.dimension_semantics<parallel>], iteration_bounds = array<i64: 2>, scalar_prefetch = 0 : i64, scratch_operands = 0 : i64, tpu.core_type = #tpu.core_type<tc>, window_params = [{transform_indices = @transform_0, window_bounds = array<i64: 1, 8, 16>}, {pipeline_mode = #tpu.pipeline_mode<synchronous>, transform_indices = @transform_1, window_bounds = array<i64: 16, 32>}, {pipeline_mode = #tpu.pipeline_mode<synchronous>, transform_indices = @transform_2, window_bounds = array<i64: 1, 32>}, {pipeline_mode = #tpu.pipeline_mode<synchronous>, transform_indices = @transform_3, window_bounds = array<i64: 8, 32>}, {transform_indices = @transform_4, window_bounds = array<i64: 1, 8, 32>}]} {
    %c0 = arith.constant 0 : index
    %c0_0 = arith.constant 0 : index
    %c0_1 = arith.constant 0 : index
    %0 = vector.load %arg1[%c0, %c0_0, %c0_1] : memref<1x8x16xf32, #tpu.memory_space<vmem>>, vector<1x8x16xf32>
    %1 = vector.shape_cast %0 : vector<1x8x16xf32> to vector<8x16xf32>
    %2 = arith.truncf %1 : vector<8x16xf32> to vector<8x16xbf16>
    %c0_2 = arith.constant 0 : index
    %c0_3 = arith.constant 0 : index
    %3 = vector.load %arg2[%c0_2, %c0_3] : memref<16x32xf32, #tpu.memory_space<vmem>>, vector<16x32xf32>
    %4 = arith.truncf %3 : vector<16x32xf32> to vector<16x32xbf16>
    %cst = arith.constant dense<0.000000e+00> : vector<8x32xf32>
    %5 = tpu.matmul %2, %4, %cst {dimension_numbers = #tpu.dot_dimension_numbers<[1], [0], [0], [1], [0, 0, 1, 1], [], []>} : vector<8x16xbf16>, vector<16x32xbf16>, vector<8x32xf32> -> vector<8x32xf32>
    %c0_4 = arith.constant 0 : index
    %c0_5 = arith.constant 0 : index
    %6 = vector.load %arg3[%c0_4, %c0_5] : memref<1x32xf32, #tpu.memory_space<vmem>>, vector<1x32xf32>
    %7 = vector.broadcast %6 : vector<1x32xf32> to vector<8x32xf32>
    %8 = arith.addf %5, %7 : vector<8x32xf32>
    %c0_6 = arith.constant 0 : index
    %c0_7 = arith.constant 0 : index
    %9 = vector.load %arg4[%c0_6, %c0_7] : memref<8x32xf32, #tpu.memory_space<vmem>>, vector<8x32xf32>
    %10 = arith.addf %8, %9 : vector<8x32xf32>
    %c0_8 = arith.constant 0 : index
    %c0_9 = arith.constant 0 : index
    %c0_10 = arith.constant 0 : index
    %11 = vector.load %arg5[%c0_8, %c0_9, %c0_10] : memref<1x8x32xf32, #tpu.memory_space<vmem>>, vector<1x8x32xf32>
    %12 = vector.shape_cast %11 : vector<1x8x32xf32> to vector<8x32xf32>
    %13 = vector.shape_cast %10 : vector<8x32xf32> to vector<1x8x32xf32>
    tpu.vector_store %arg5[%c0_8, %c0_9, %c0_10], %13 {strides = array<i32>} : memref<1x8x32xf32, #tpu.memory_space<vmem>>, vector<1x8x32xf32>,
    return
  }
  func.func @transform_0(%arg0: i32) -> (i32, i32, i32) {
    %c0_i32 = arith.constant 0 : i32
    %c0_i32_0 = arith.constant 0 : i32
    %c0_i32_1 = arith.constant 0 : i32
    return %arg0, %c0_i32, %c0_i32_0 : i32, i32, i32
  }
  func.func @transform_1(%arg0: i32) -> (i32, i32) {
    %c0_i32 = arith.constant 0 : i32
    %c0_i32_0 = arith.constant 0 : i32
    %c0_i32_1 = arith.constant 0 : i32
    return %c0_i32, %c0_i32_0 : i32, i32
  }
  func.func @transform_2(%arg0: i32) -> (i32, i32) {
    %c0_i32 = arith.constant 0 : i32
    %c0_i32_0 = arith.constant 0 : i32
    %c0_i32_1 = arith.constant 0 : i32
    return %c0_i32, %c0_i32_0 : i32, i32
  }
  func.func @transform_3(%arg0: i32) -> (i32, i32) {
    %c0_i32 = arith.constant 0 : i32
    %c0_i32_0 = arith.constant 0 : i32
    %c0_i32_1 = arith.constant 0 : i32
    return %c0_i32, %c0_i32_0 : i32, i32
  }
  func.func @transform_4(%arg0: i32) -> (i32, i32, i32) {
    %c0_i32 = arith.constant 0 : i32
    %c0_i32_0 = arith.constant 0 : i32
    %c0_i32_1 = arith.constant 0 : i32
    return %arg0, %c0_i32, %c0_i32_0 : i32, i32, i32
  }
}

</mosaic_0001>

<bundles_post_ra>
// kernel: tpu_custom_call.1
= control target key start
LH: loop header
LB: loop body
LE: loop exit
PB: predicated region body
PF: predicated region fallthrough
CT: control target
= control target key end

     0   :  { %9 = vsyncpa [#allocation3], 0  ;;  %s864_s0 = inlined_call_operand.hbm [shape: f32[2,8,16], index: 0, kind: input, shape index: {}]   ;;  %s865_s1 = inlined_call_operand.hbm [shape: f32[16,32], index: 1, kind: input, shape index: {}]   ;;  %s866_s2 = inlined_call_operand.vmem [shape: f32[1,32], index: 2, kind: input, shape index: {}]   ;;  %s867_s3 = inlined_call_operand.hbm [shape: f32[8,32], index: 3, kind: input, shape index: {}]   ;;  %s868_s4 = inlined_call_operand.hbm [shape: f32[2,8,32], index: 4, kind: output, shape index: {}]  }
   0x1   :  { %11 = vsyncpa [#allocation3 + $0x1], 0 }
   0x2   :  { %12 = vsyncpa [#allocation6], 0 }
   0x3   :  { %13 = vsyncpa [#allocation4], 0 }
   0x4   :  { %15 = vsyncpa [#allocation4 + $0x1], 0  ;;  %s684_s15 = smov 0   ;;  %s686_s16 = smov 0  }
   0x5   :  { %s688_s17 = smov 0   ;;  %s690_s18 = smov 0  }
   0x6 LB: > { %s705_s19 = sadd.s32 4294967295, %s649_s18   ;;  %s404_s20 = sadd.s32 4294967294, %s649_s18   ;;  %s649_s18 = sphi %s690_s18, %s890_s18   ;;  %s645_s17 = sphi %s688_s17, %s889_s17   ;;  %s641_s16 = sphi %s686_s16, %s888_s16   ;;  %s637_s15 = sphi %s684_s15, %s887_s15  }
   0x7   : > { %p41_p0 = scmp.ne.s32.totalorder %s641_s16, %s637_s15  ;;  %p869_p1 = scmp.eq.s32.totalorder %s705_s19, 0 }
   0x8   : > { %p134_p3 = scmp.eq.s32.totalorder %s404_s20, 1  ;;  %p405_p5 = scmp.ge.s32.totalorder %s649_s18, 1 }
   0x9   : > { %p714_p4 = por %p869_p1, %p41_p0  ;;  %p141_p7 = scmp.lt.s32.totalorder %s649_s18, 3 }
   0xa   : > { %p719_p6 = por %p134_p3, %p41_p0  ;;  %s651_s24 = smov [#allocation5]  }
   0xb   : > { %s873_s21 = scalar_select %p714_p4, 1, 0 }
   0xc   : > { %s874_s22 = scalar_select %p719_p6, 1, 0 }
   0xd   : > { %p724_p8 = pnand %p405_p5, %p141_p7  ;;  %s153_s25 = sshll.u32 %s651_s24, 4  ;;  %s154_s25 = int_to_ptr.vmem [resolvable:$true] %s153_s25 }
   0xe   : > { %s652_s27 = smov [#allocation7]   ;;  %s512_s29 = scalar_lea.vmem %s154_s25, 256 }
   0xf   : > { %s875_s23 = scalar_select %p724_p8, 1, 0 }
  0x10   : > { %p442_p9 = pneg %p724_p8  ;;  %s170_s28 = sshll.u32 %s652_s27, 4  ;;  %s171_s28 = int_to_ptr.vmem [resolvable:$true] %s170_s28 }
  0x11   : > { %p513_p13 = scmp.ne.s32.totalorder %s154_s25, %s512_s29  ;;  %p520_p5 = scmp.lt.s32.totalorder %s154_s25, %s154_s25 }
  0x12   : > { %p733_p11 = pnand %p442_p9, %p869_p1  ;;  %p521_p7 = scmp.lt.s32.totalorder %s512_s29, %s512_s29 }
  0x14   : > { %p503_p12 = pneg %p733_p11  ;;  %p522_p10 = por %p521_p7, %p520_p5 }
  0x16   : > { %p515_p0 = pnand %p513_p13, %p503_p12 }
  0x18   : > { %p516_p3 = pneg %p515_p0 }
  0x1a   : > { %p523_p9 = pnand %p522_p10, %p516_p3 }
  0x1c   : > { %526 = shalt.err (!%p523_p9)
}
  0x1d   : > { %s653_s30 = smov 128   ;;  %s654_s5 = smov 8  }
  0x1e   : > { %445 = dma.hbm_to_vmem [thread:$0]  (!%p733_p11), %s865_s1, 256, %s154_s25, [#allocation6], %s653_s30, %s653_s30, %s654_s5  }
  0x1f   : > { %s538_s8 = scalar_lea.vmem %s171_s28, 128  ;;  %p546_p2 = scmp.lt.s32.totalorder %s171_s28, %s171_s28 }
  0x20   : > { %p539_p1 = scmp.ne.s32.totalorder %s171_s28, %s538_s8  ;;  %p547_p6 = scmp.lt.s32.totalorder %s538_s8, %s538_s8 }
  0x22   : > { %p541_p13 = pnand %p539_p1, %p503_p12  ;;  %p548_p5 = por %p547_p6, %p546_p2 }
  0x24   : > { %p542_p0 = pneg %p541_p13 }
  0x26   : > { %p549_p10 = pnand %p548_p5, %p542_p0 }
  0x28   : > { %552 = shalt.err (!%p549_p10)
}
  0x29   : > { %448 = dma.hbm_to_vmem [thread:$0]  (!%p733_p11), %s867_s3, 128, %s171_s28, [#allocation6]  }
  0x2a   : > { %s756_s11 = sadd.s32 1, %s649_s18   ;;  %s28_s12 = sadd.s32 1, %s645_s17 }
  0x2b   : > { %s25_s13 = ssub.s32 %s649_s18, %s756_s11  ;;  %p35_p1 = scmp.ne.s32.totalorder %s645_s17, %s641_s16 }
  0x2c   : > { %p26_p2 = scmp.eq.s32.totalorder %s25_s13, 0  ;;  %p36_p6 = scmp.eq.s32.totalorder %s649_s18, 0 }
  0x2d   : > { %p877_p12 = scmp.eq.s32.totalorder %s705_s19, 1  ;;  %p459_p7 = scmp.lt.s32.totalorder %s649_s18, 2 }
  0x2e   : > { %s772_s20 = scalar_select %p26_p2, %s645_s17, %s28_s12  }
  0x2f   : > { %p766_p3 = por %p877_p12, %p35_p1  ;;  %p37_p9 = por %p36_p6, %p35_p1 }
  0x30   : > { %s181_s24 = sand.u32 1, %s645_s17   ;;  %s410_s26 = sshll.u32 %s649_s18, 7 }
  0x31   : > { %s878_s14 = scalar_select %p766_p3, 1, 0 }
  0x32   : > { %s409_s25 = sshll.u32 %s181_s24, 3  ;;  %s779_s29 = scalar_lea.hbm %s864_s0, %s410_s26 }
  0x33   : > { %s185_s30 = scalar_lea.vmem [#allocation2], %s409_s25  ;;  %p781_p11 = pnand %p459_p7, %p37_p9 }
  0x34   : > { %s192_s5 = sshll.u32 %s185_s30, 4  ;;  %s182_s7 = scalar_lea.sflag [#allocation3], %s181_s24  ;;  %s193_s5 = int_to_ptr.vmem [resolvable:$true] %s192_s5 }
  0x35   : > { %s553_s8 = scalar_lea.hbm %s779_s29, 128  ;;  %p555_p0 = pneg %p781_p11 }
  0x36   : > { %p554_p13 = scmp.ne.s32.totalorder %s779_s29, %s553_s8  ;;  %s558_s12 = scalar_lea.hbm %s864_s0, 256 }
  0x37   : > { %p559_p1 = scmp.lt.s32.totalorder %s779_s29, %s864_s0  ;;  %p560_p2 = scmp.lt.s32.totalorder %s558_s12, %s553_s8 }
  0x38   : > { %p556_p5 = pnand %p555_p0, %p554_p13 }
  0x39   : > { %p561_p6 = por %p560_p2, %p559_p1 }
  0x3a   : > { %p557_p10 = pneg %p556_p5 }
  0x3c   : > { %p562_p12 = pnand %p561_p6, %p557_p10 }
  0x3e   : > { %565 = shalt.err (!%p562_p12)
}
  0x3f   : > { %s566_s26 = scalar_lea.vmem %s193_s5, 128  ;;  %s655_s24 = smov [#allocation2]  }
  0x40   : > { %p567_p7 = scmp.ne.s32.totalorder %s193_s5, %s566_s26  ;;  %s571_s27 = sshll.u32 %s655_s24, 4  ;;  %s572_s27 = int_to_ptr.vmem [resolvable:$false] %s571_s27 }
  0x41   : > { %s573_s28 = scalar_lea.vmem %s572_s27, 256  ;;  %p574_p13 = scmp.lt.s32.totalorder %s193_s5, %s572_s27 }
  0x42   : > { %p569_p9 = pnand %p567_p7, %p555_p0  ;;  %p575_p5 = scmp.lt.s32.totalorder %s573_s28, %s566_s26 }
  0x44   : > { %p570_p3 = pneg %p569_p9  ;;  %p576_p4 = por %p575_p5, %p574_p13 }
  0x46   : > { %p577_p8 = pnand %p576_p4, %p570_p3 }
  0x48   : > { %580 = shalt.err (!%p577_p8)
}
  0x49   : > { %452 = dma.hbm_to_vmem [thread:$0]  (!%p781_p11), %s779_s29, 128, %s193_s5, %s182_s7  }
  0x4a   : > { %p880_p10 = scmp.ne.s32.totalorder %s875_s23, 0 }
  0x4b   : > { %s802_s30 = sand.u32 (!%p880_p10), 1, %s641_s16   ;;  %p881_p0 = scmp.ne.s32.totalorder (!%p880_p10), %s873_s21, 0 }
  0x4c   : > { %201 = sbr.rel (%p880_p10) target bundleno = 302 (0x12e), region = 36  ;;  %s412_s8 = sshll.u32 (!%p880_p10), %s802_s30, 3 }
  0x4d   : > { %s204_s9 = scalar_lea.sflag (!%p880_p10), [#allocation3], %s802_s30  ;;  %s207_s10 = scalar_lea.vmem (!%p880_p10), [#allocation2], %s412_s8 }
  0x51   : > { %624 = dma.done.wait (%p881_p0), %s204_s9, 128  }
  0x52   : > { %626 = vsyncadd (%p881_p0), %s204_s9, 4294967168  ;;  %p882_p4 = scmp.eq.s32.totalorder %s705_s19, 0 }
  0x54   : > { %628 = dma.done.wait (%p882_p4), [#allocation6], 384   ;;  %p883_p8 = pmov %p882_p4 }
  0x55   : > { %v656_v0 = vmov 0.0   ;;  %vm657_vm0 = vmmov 0   ;;  %v243_v1 = vld [vmem:[#allocation5] sm:$0xff]  ;;  %v244_v2 = vld [vmem:[#allocation5 + $0x8] sm:$0xff]  ;;  %v241_v3 = vld [vmem:[%s207_s10] sm:$0xff]  ;;  %vm253_vm1 = vcmask 130048  }
  0x56   : > { %630 = vsyncadd (%p883_p8), [#allocation6], 4294966912  ;;  %424 = vmatprep.subr.bf16.mxu0 %v656_v0  ;;  %426 = vmatprep.mubr.msk.bf16.mxu0 %vm657_vm0, %v656_v0  ;;  %v245_v4 = vpack.c.bf16 %v244_v2, %v243_v1  ;;  %v242_v5 = vpack.c.bf16 %v241_v3, %v241_v3  ;;  %v416_v6 = vld [vmem:[%s866_s2] ss:$0 sm:$0xff]  ;;  %s419_s29 = sshll.u32 %s705_s19, 7  ;;  %s239_s5 = scalar_lea.vmem [#allocation8], %s412_s8 }
  0x57   : > { %v297_v8 = vld [vmem:[#allocation7] sm:$0xff]  ;;  %s315_s6 = sshll.u32 %s239_s5, 4  ;;  %vm299_vm2 = vcmask 261120   ;;  %s821_s13 = scalar_lea.hbm %s868_s4, %s419_s29  ;;  %s823_s6 = int_to_ptr.vmem [resolvable:$true] %s315_s6 }
  0x58   : > { %425 = vmatpush3.bf16.msra.mxu0 %v245_v4  ;;  %s302_s19 = scalar_lea.sflag [#allocation4], %s802_s30  ;;  %s581_s25 = scalar_lea.vmem %s823_s6, 128 }
  0x59   : > { %p582_p3 = scmp.ne.s32.totalorder %s823_s6, %s581_s25  ;;  %p884_p11 = scmp.ne.s32.totalorder %s878_s14, 0 }
  0x5a   : > { %s658_s26 = smov [#allocation8]  }
  0x5b   : > { %427 = vmatmul.mubr.msk.bf16.vlgmr.msra.gmra.mxu0 %vm253_vm1, %v242_v5  ;;  %p583_p1 = pnand %p582_p3, %p884_p11  ;;  %s585_s24 = sshll.u32 %s658_s26, 4  ;;  %s586_s24 = int_to_ptr.vmem [resolvable:$false] %s585_s24 }
  0x5c   : > { %s587_s27 = scalar_lea.vmem %s586_s24, 256  ;;  %p588_p6 = scmp.lt.s32.totalorder %s823_s6, %s586_s24 }
  0x5d   : > { %p584_p2 = pneg %p583_p1  ;;  %p589_p12 = scmp.lt.s32.totalorder %s587_s27, %s581_s25 }
  0x5f   : > { %p590_p7 = por %p589_p12, %p588_p6 }
  0x61   : > { %p591_p9 = pnand %p590_p7, %p584_p2 }
 0x11b   : > { %v291_v7 = vpop.f32.mrf.mxu0 }
 0x11c   : > { %v292_v9 = vadd.f32 %v416_v6, %v291_v7 }
 0x11d   : > { %v428_v10 = vpop.f32.mrf.mxu0 }
 0x11e   : > { %v298_v11 = vadd.f32 %v297_v8, %v292_v9 }
 0x11f   : > { %v294_v12 = vpop.f32.mrf.mxu0 }
 0x120   : > { %300 = vst.msk [vmem:[%s239_s5] sm:$0xff] %vm299_vm2, %v298_v11 }
 0x121   : > { %v429_v13 = vpop.f32.mrf.mxu0 }
 0x122   : > { %594 = shalt.err (!%p591_p9)
}
 0x123   : > { %s595_s28 = scalar_lea.hbm %s821_s13, 128  ;;  %s599_s9 = scalar_lea.hbm %s868_s4, 256 }
 0x124   : > { %p596_p13 = scmp.ne.s32.totalorder %s821_s13, %s595_s28  ;;  %p600_p0 = scmp.lt.s32.totalorder %s821_s13, %s868_s4 }
 0x125   : > { %p601_p4 = scmp.lt.s32.totalorder %s599_s9, %s595_s28 }
 0x126   : > { %p597_p5 = pnand %p596_p13, %p884_p11 }
 0x127   : > { %p602_p8 = por %p601_p4, %p600_p0 }
 0x128   : > { %p598_p10 = pneg %p597_p5 }
 0x12a   : > { %p603_p3 = pnand %p602_p8, %p598_p10 }
 0x12c   : > { %606 = shalt.err (!%p603_p3)
}
 0x12d   : > { %440 = dma.vmem_to_hbm [thread:$0]  (%p884_p11), %s823_s6, 128, %s821_s13, %s302_s19  }
 0x12e PF: > { %s327_s23 = sand.u32 1, %s637_s15   ;;  %p885_p1 = scmp.ne.s32.totalorder %s874_s22, 0 }
 0x12f   : > { %p886_p2 = scmp.ge.s32.totalorder %s649_s18, 2  ;;  %s328_s29 = scalar_lea.sflag [#allocation4], %s327_s23 }
 0x131   : > { %p454_p6 = pnand %p886_p2, %p885_p1 }
 0x133   : > { %p455_p12 = pneg %p454_p6 }
 0x135   : > { %632 = dma.done.wait (%p455_p12), %s328_s29, 128  }
 0x136   : > { %634 = vsyncadd (%p455_p12), %s328_s29, 4294967168  ;;  %p18_p7 = scmp.ge.s32.totalorder %s756_s11, 4   ;;  %s887_s15 = smov %s641_s16 }
 0x137   : > { %s888_s16 = smov %s645_s17  ;;  %s889_s17 = smov %s772_s20 }
 0x138   : > { %s890_s18 = smov %s756_s11  ;;  %20 = sbr.rel (!%p18_p7) target bundleno = 6 (0x6), region = 89 }
 0x13d   :  { %333 = vsyncpa [#allocation3], 1 }
 0x13e   :  { %335 = vsyncpa [#allocation3 + $0x1], 1 }
 0x13f   :  { %336 = vsyncpa [#allocation6], 1 }
 0x140   :  { %337 = vsyncpa [#allocation4], 1 }
 0x141   :  { %339 = vsyncpa [#allocation4 + $0x1], 1 }

</bundles_post_ra>
